<compile_context>
chip_gen: v7x
topology: tpu7x:2x2x1
jax: 0.10.0
libtpu: 0.0.40
codegen_flags: <defaults>
</compile_context>

<pallas_src>
import math
import jax
import jax.numpy as jnp
from jax.experimental import pallas as pl
from jax.experimental.pallas import tpu as pltpu

# ---- model config (small, consistent with the module's forward) -------------
D_MODEL = 32      # d_model
N_HEADS = 4       # num_heads
D_HEAD = D_MODEL // N_HEADS
D_FF = 64         # d_ff
SEQ = 8           # sequence length
BATCH = 2
LN_EPS = 1e-5
_INV_SQRT2 = 1.0 / math.sqrt(2.0)
_NEG_INF = -1e9


def bert_layer_kernel(x_ref, mask_ref, hmask_ref,
                      wqkv_ref, bqkv_ref, wo_ref, bo_ref,
                      w1_ref, b1_ref, w2_ref, b2_ref,
                      gamma_ref, beta_ref,
                      out_ref, attn_ref):
    # One block of R = (batches_per_step * S) rows per grid step.
    x = x_ref[...]                                  # (R, D) f32
    mask = mask_ref[...]                            # (R, R) additive (block-diag + user mask)

    # --- fused QKV projection: one MXU push ---
    qkv = jnp.dot(x, wqkv_ref[...], preferred_element_type=jnp.float32) + bqkv_ref[...]
    q = qkv[:, 0:D_MODEL]                           # static lane slices of the fused result
    k = qkv[:, D_MODEL:2 * D_MODEL]
    v = qkv[:, 2 * D_MODEL:3 * D_MODEL]

    # --- head-batched attention (no per-head lane slices / concat) ---
    # hmask[h] is 1.0 on head-h lanes, 0.0 elsewhere, so (q*hmask[h])·k == q_h·k_h.
    hmask = hmask_ref[...]                          # (H, 1, D)
    qh = q[None, :, :] * hmask                      # (H, R, D)
    vh = v[None, :, :] * hmask                      # (H, R, D)
    kb = jnp.broadcast_to(k[None, :, :], qh.shape)  # (H, R, D)

    scale = 1.0 / math.sqrt(D_HEAD)
    s = jnp.einsum('hqd,hkd->hqk', qh, kb,
                   preferred_element_type=jnp.float32) * scale      # (H, R, R)
    s = s + mask[None, :, :]                        # single broadcast of the mask

    # numerically-stable softmax over keys (approx reciprocal -> EUP slot)
    s = s - jnp.max(s, axis=-1, keepdims=True)
    p = jnp.exp(s)
    p = p * pl.reciprocal(jnp.sum(p, axis=-1, keepdims=True), approx=True)
    attn_ref[0] = p                                 # (H, R, R) lane-dense store

    # P @ V per head; vh is zero outside head-h lanes, so summing over heads
    # reconstructs the concatenated multi-head context exactly.
    ctx = jnp.einsum('hqk,hkd->hqd', p, vh,
                     preferred_element_type=jnp.float32)             # (H, R, D)
    context = jnp.sum(ctx, axis=0)                                   # (R, D)

    attn_out = jnp.dot(context, wo_ref[...],
                       preferred_element_type=jnp.float32) + bo_ref[...]

    # --- feed-forward: Linear -> GELU(exact erf, parity with nn.GELU) -> Linear ---
    h1 = jnp.dot(attn_out, w1_ref[...],
                 preferred_element_type=jnp.float32) + b1_ref[...]
    h1 = 0.5 * h1 * (1.0 + jax.lax.erf(h1 * _INV_SQRT2))
    ff = jnp.dot(h1, w2_ref[...],
                 preferred_element_type=jnp.float32) + b2_ref[...]

    # --- residual + LayerNorm over last dim (matches BERTLayer.forward) ---
    res = ff + attn_out
    mu = jnp.mean(res, axis=-1, keepdims=True)
    var = jnp.mean((res - mu) ** 2, axis=-1, keepdims=True)
    norm = (res - mu) * jax.lax.rsqrt(var + LN_EPS)
    out_ref[...] = norm * gamma_ref[...] + beta_ref[...]


def _default_batch_block(batch):
    """Batches processed per grid step.  Single step on 1-TC chips (v5e/v6e);
    two parallel steps on 2-TC chips (v7x) so both TensorCores get work."""
    try:
        kind = jax.devices()[0].device_kind.lower()
    except Exception:
        kind = ""
    two_tensorcores = ("v7" in kind) or ("tpu7" in kind)
    if two_tensorcores and batch >= 2 and batch % 2 == 0:
        return batch // 2
    return batch


def bert_layer(hidden_states, params, attention_mask=None, batch_block=None):
    """hidden_states: [B, S, D] f32; attention_mask: optional additive [B, 1, S]."""
    B, S, D = hidden_states.shape
    H = N_HEADS
    if attention_mask is None:
        attention_mask = jnp.zeros((B, 1, S), jnp.float32)

    BB = _default_batch_block(B) if batch_block is None else batch_block
    if BB < 1 or B % BB != 0:
        BB = 1
    n_steps = B // BB
    R = BB * S                                      # rows per grid step

    # Fold batch into rows.
    x2d = hidden_states.reshape(B * S, D).astype(jnp.float32)

    # Block-diagonal additive mask per step: within-batch entries carry the
    # user mask; cross-batch entries are -1e9 (softmax -> exactly 0 in f32).
    am = attention_mask.reshape(B, S).astype(jnp.float32)
    same = (jnp.arange(R)[:, None] // S) == (jnp.arange(R)[None, :] // S)   # (R, R) bool
    step_masks = []
    for i in range(n_steps):
        keys = am[i * BB:(i + 1) * BB].reshape(R)                            # (R,)
        step_masks.append(jnp.where(same, keys[None, :], jnp.float32(_NEG_INF)))
    mask2d = jnp.concatenate(step_masks, axis=0)                             # (B*S, R)

    # Per-head lane masks (H, 1, D).
    head_ids = jnp.arange(D) // D_HEAD
    hmask = (head_ids[None, :] == jnp.arange(H)[:, None]).astype(jnp.float32)[:, None, :]

    # Fused QKV weight/bias.
    wqkv = jnp.concatenate([params["wq"], params["wk"], params["wv"]], axis=1)  # (D, 3D)
    bqkv = jnp.concatenate([params["bq"], params["bk"], params["bv"]], axis=1)  # (1, 3D)

    full = lambda shape: pl.BlockSpec(shape, lambda i: (0,) * len(shape))

    in_specs = [
        pl.BlockSpec((R, D), lambda i: (i, 0)),      # hidden_states rows
        pl.BlockSpec((R, R), lambda i: (i, 0)),      # additive block mask
        full((H, 1, D)),                             # head lane masks
        full((D, 3 * D)), full((1, 3 * D)),          # fused Wqkv, bqkv
        full((D, D)), full((1, D)),                  # Wo, bo
        full((D, D_FF)), full((1, D_FF)),            # W1, b1
        full((D_FF, D)), full((1, D)),               # W2, b2
        full((1, D)), full((1, D)),                  # gamma, beta
    ]
    out_specs = [
        pl.BlockSpec((R, D), lambda i: (i, 0)),          # output rows
        pl.BlockSpec((1, H, R, R), lambda i: (i, 0, 0, 0)),  # attention weights per step
    ]
    out_shape = [
        jax.ShapeDtypeStruct((B * S, D), jnp.float32),
        jax.ShapeDtypeStruct((n_steps, H, R, R), jnp.float32),
    ]

    # Advisory cost estimate (tiny kernel) so XLA doesn't over-schedule around it.
    flops = (2 * B * S * D * (3 * D)                 # fused QKV
             + 2 * n_steps * H * R * R * D * 2       # scores + P@V
             + 2 * B * S * D * D                     # output projection
             + 2 * B * S * (D * D_FF + D_FF * D))    # FFN
    transcendentals = n_steps * H * R * R + B * S * D_FF + 2 * B * S
    bytes_accessed = 4 * (x2d.size + mask2d.size + hmask.size + wqkv.size + bqkv.size
                          + params["wo"].size + params["w1"].size + params["w2"].size
                          + 4 * D + B * S * D + n_steps * H * R * R)

    fn = pl.pallas_call(
        bert_layer_kernel,
        out_shape=out_shape,
        grid_spec=pltpu.PrefetchScalarGridSpec(
            num_scalar_prefetch=0,
            grid=(n_steps,),
            in_specs=in_specs,
            out_specs=out_specs,
        ),
        compiler_params=pltpu.CompilerParams(
            dimension_semantics=("parallel",)),
        cost_estimate=pl.CostEstimate(flops=flops,
                                      transcendentals=transcendentals,
                                      bytes_accessed=bytes_accessed),
    )
    out2d, attn_full = fn(x2d, mask2d, hmask, wqkv, bqkv,
                          params["wo"], params["bo"], params["w1"], params["b1"],
                          params["w2"], params["b2"], params["gamma"], params["beta"])

    output = out2d.reshape(B, S, D)
    # Extract per-batch (S, S) diagonal blocks -> (B, H, S, S) (plain JAX, outside kernel).
    blocks = [attn_full[:, :, b * S:(b + 1) * S, b * S:(b + 1) * S] for b in range(BB)]
    attn = jnp.stack(blocks, axis=1).reshape(B, H, S, S)
    return output, attn


def init_params(key):
    keys = jax.random.split(key, 12)
    std = 0.02
    p = {
        "wq": jax.random.normal(keys[0], (D_MODEL, D_MODEL), jnp.float32) * std,
        "bq": jax.random.normal(keys[1], (1, D_MODEL), jnp.float32) * std,
        "wk": jax.random.normal(keys[2], (D_MODEL, D_MODEL), jnp.float32) * std,
        "bk": jax.random.normal(keys[3], (1, D_MODEL), jnp.float32) * std,
        "wv": jax.random.normal(keys[4], (D_MODEL, D_MODEL), jnp.float32) * std,
        "bv": jax.random.normal(keys[5], (1, D_MODEL), jnp.float32) * std,
        "wo": jax.random.normal(keys[6], (D_MODEL, D_MODEL), jnp.float32) * std,
        "bo": jax.random.normal(keys[7], (1, D_MODEL), jnp.float32) * std,
        "w1": jax.random.normal(keys[8], (D_MODEL, D_FF), jnp.float32) * std,
        "b1": jax.random.normal(keys[9], (1, D_FF), jnp.float32) * std,
        "w2": jax.random.normal(keys[10], (D_FF, D_MODEL), jnp.float32) * std,
        "b2": jax.random.normal(keys[11], (1, D_MODEL), jnp.float32) * std,
        "gamma": jnp.ones((1, D_MODEL), jnp.float32),
        "beta": jnp.zeros((1, D_MODEL), jnp.float32),
    }
    return p


if __name__ == "__main__":
    key = jax.random.PRNGKey(0)
    k_x, k_p = jax.random.split(key)
    hidden_states = jax.random.normal(k_x, (BATCH, SEQ, D_MODEL), jnp.float32)
    params = init_params(k_p)

    # TODO(synk): training-mode dropout and the host-side ensemble/uncertainty
    # bookkeeping of ReliableBERT are omitted (inference semantics, Python logic).
    output, attn_weights = bert_layer(hidden_states, params, attention_mask=None)
    jax.block_until_ready((output, attn_weights))

    assert output.shape == (BATCH, SEQ, D_MODEL)
    assert attn_weights.shape == (BATCH, N_HEADS, SEQ, SEQ)
    print("KERNEL_OK")
</pallas_src>

<mosaic_0001>
module attributes {stable_mosaic.version = 11 : i64} {
  func.func @bert_layer_kernel(%arg0: i32, %arg1: memref<16x32xf32, #tpu.memory_space<vmem>>, %arg2: memref<16x16xf32, #tpu.memory_space<vmem>>, %arg3: memref<4x1x32xf32, #tpu.memory_space<vmem>>, %arg4: memref<32x96xf32, #tpu.memory_space<vmem>>, %arg5: memref<1x96xf32, #tpu.memory_space<vmem>>, %arg6: memref<32x32xf32, #tpu.memory_space<vmem>>, %arg7: memref<1x32xf32, #tpu.memory_space<vmem>>, %arg8: memref<32x64xf32, #tpu.memory_space<vmem>>, %arg9: memref<1x64xf32, #tpu.memory_space<vmem>>, %arg10: memref<64x32xf32, #tpu.memory_space<vmem>>, %arg11: memref<1x32xf32, #tpu.memory_space<vmem>>, %arg12: memref<1x32xf32, #tpu.memory_space<vmem>>, %arg13: memref<1x32xf32, #tpu.memory_space<vmem>>, %arg14: memref<16x32xf32, #tpu.memory_space<vmem>>, %arg15: memref<1x4x16x16xf32, #tpu.memory_space<vmem>>) attributes {dimension_semantics = [#tpu.dimension_semantics<parallel>], iteration_bounds = array<i64: 1>, scalar_prefetch = 0 : i64, scratch_operands = 0 : i64, tpu.core_type = #tpu.core_type<tc>, window_params = [{transform_indices = @transform_0, window_bounds = array<i64: 16, 32>}, {transform_indices = @transform_1, window_bounds = array<i64: 16, 16>}, {pipeline_mode = #tpu.pipeline_mode<synchronous>, transform_indices = @transform_2, window_bounds = array<i64: 4, 1, 32>}, {pipeline_mode = #tpu.pipeline_mode<synchronous>, transform_indices = @transform_3, window_bounds = array<i64: 32, 96>}, {pipeline_mode = #tpu.pipeline_mode<synchronous>, transform_indices = @transform_4, window_bounds = array<i64: 1, 96>}, {pipeline_mode = #tpu.pipeline_mode<synchronous>, transform_indices = @transform_5, window_bounds = array<i64: 32, 32>}, {pipeline_mode = #tpu.pipeline_mode<synchronous>, transform_indices = @transform_6, window_bounds = array<i64: 1, 32>}, {pipeline_mode = #tpu.pipeline_mode<synchronous>, transform_indices = @transform_7, window_bounds = array<i64: 32, 64>}, {pipeline_mode = #tpu.pipeline_mode<synchronous>, transform_indices = @transform_8, window_bounds = array<i64: 1, 64>}, {pipeline_mode = #tpu.pipeline_mode<synchronous>, transform_indices = @transform_9, window_bounds = array<i64: 64, 32>}, {pipeline_mode = #tpu.pipeline_mode<synchronous>, transform_indices = @transform_10, window_bounds = array<i64: 1, 32>}, {pipeline_mode = #tpu.pipeline_mode<synchronous>, transform_indices = @transform_11, window_bounds = array<i64: 1, 32>}, {pipeline_mode = #tpu.pipeline_mode<synchronous>, transform_indices = @transform_12, window_bounds = array<i64: 1, 32>}, {transform_indices = @transform_13, window_bounds = array<i64: 16, 32>}, {transform_indices = @transform_14, window_bounds = array<i64: 1, 4, 16, 16>}]} {
    %c0 = arith.constant 0 : index
    %c0_0 = arith.constant 0 : index
    %0 = vector.load %arg1[%c0, %c0_0] : memref<16x32xf32, #tpu.memory_space<vmem>>, vector<16x32xf32>
    %c0_1 = arith.constant 0 : index
    %c0_2 = arith.constant 0 : index
    %1 = vector.load %arg2[%c0_1, %c0_2] : memref<16x16xf32, #tpu.memory_space<vmem>>, vector<16x16xf32>
    %c0_3 = arith.constant 0 : index
    %c0_4 = arith.constant 0 : index
    %2 = vector.load %arg4[%c0_3, %c0_4] : memref<32x96xf32, #tpu.memory_space<vmem>>, vector<32x96xf32>
    %cst = arith.constant dense<0.000000e+00> : vector<16x96xf32>
    %3 = tpu.matmul %0, %2, %cst {dimension_numbers = #tpu.dot_dimension_numbers<[1], [0], [0], [1], [0, 0, 1, 1], [], []>} : vector<16x32xf32>, vector<32x96xf32>, vector<16x96xf32> -> vector<16x96xf32>
    %c0_5 = arith.constant 0 : index
    %c0_6 = arith.constant 0 : index
    %4 = vector.load %arg5[%c0_5, %c0_6] : memref<1x96xf32, #tpu.memory_space<vmem>>, vector<1x96xf32>
    %5 = vector.broadcast %4 : vector<1x96xf32> to vector<16x96xf32>
    %6 = arith.addf %3, %5 : vector<16x96xf32>
    %7 = vector.extract_strided_slice %6 {offsets = [0, 0], sizes = [16, 32], strides = [1, 1]} : vector<16x96xf32> to vector<16x32xf32>
    %8 = vector.extract_strided_slice %6 {offsets = [0, 32], sizes = [16, 32], strides = [1, 1]} : vector<16x96xf32> to vector<16x32xf32>
    %9 = vector.extract_strided_slice %6 {offsets = [0, 64], sizes = [16, 32], strides = [1, 1]} : vector<16x96xf32> to vector<16x32xf32>
    %c0_7 = arith.constant 0 : index
    %c0_8 = arith.constant 0 : index
    %c0_9 = arith.constant 0 : index
    %10 = vector.load %arg3[%c0_7, %c0_8, %c0_9] : memref<4x1x32xf32, #tpu.memory_space<vmem>>, vector<4x1x32xf32>
    %11 = vector.shape_cast %7 : vector<16x32xf32> to vector<1x16x32xf32>
    %12 = vector.broadcast %11 : vector<1x16x32xf32> to vector<4x16x32xf32>
    %13 = vector.broadcast %10 : vector<4x1x32xf32> to vector<4x16x32xf32>
    %14 = arith.mulf %12, %13 : vector<4x16x32xf32>
    %15 = vector.shape_cast %9 : vector<16x32xf32> to vector<1x16x32xf32>
    %16 = vector.broadcast %15 : vector<1x16x32xf32> to vector<4x16x32xf32>
    %17 = vector.broadcast %10 : vector<4x1x32xf32> to vector<4x16x32xf32>
    %18 = arith.mulf %16, %17 : vector<4x16x32xf32>
    %19 = vector.shape_cast %8 : vector<16x32xf32> to vector<1x16x32xf32>
    %20 = vector.shape_cast %19 : vector<1x16x32xf32> to vector<1x16x32xf32>
    %21 = vector.broadcast %20 : vector<1x16x32xf32> to vector<4x16x32xf32>
    "tpu.trace_start"() <{level = 10 : i32, message = "hqd,hkd->hqk"}> : () -> ()
    %cst_10 = arith.constant dense<0.000000e+00> : vector<4x16x16xf32>
    %22 = tpu.matmul %14, %21, %cst_10 {dimension_numbers = #tpu.dot_dimension_numbers<[2], [2], [1], [1], [0, 0, 0, 1, 1, 1], [0], [0]>} : vector<4x16x32xf32>, vector<4x16x32xf32>, vector<4x16x16xf32> -> vector<4x16x16xf32>
    "tpu.trace_stop"() : () -> ()
    %cst_11 = arith.constant 0.353553385 : f32
    %23 = vector.broadcast %cst_11 : f32 to vector<4x16x16xf32>
    %24 = arith.mulf %22, %23 : vector<4x16x16xf32>
    %25 = vector.shape_cast %1 : vector<16x16xf32> to vector<1x16x16xf32>
    %26 = vector.broadcast %25 : vector<1x16x16xf32> to vector<4x16x16xf32>
    %27 = arith.addf %24, %26 : vector<4x16x16xf32>
    %cst_12 = arith.constant dense<0xFF800000> : vector<4x16xf32>
    %28 = vector.multi_reduction <maximumf>, %27, %cst_12 [2] : vector<4x16x16xf32> to vector<4x16xf32>
    %29 = vector.shape_cast %28 : vector<4x16xf32> to vector<4x16x1xf32>
    %30 = vector.broadcast %29 : vector<4x16x1xf32> to vector<4x16x16xf32>
    %31 = arith.subf %27, %30 : vector<4x16x16xf32>
    %32 = math.exp %31 : vector<4x16x16xf32>
    %cst_13 = arith.constant dense<0.000000e+00> : vector<4x16xf32>
    %33 = vector.multi_reduction <add>, %32, %cst_13 [2] : vector<4x16x16xf32> to vector<4x16xf32>
    %34 = vector.shape_cast %33 : vector<4x16xf32> to vector<4x16x1xf32>
    %35 = tpu.reciprocal %34 {approx = true} : vector<4x16x1xf32> -> vector<4x16x1xf32>
    %36 = vector.broadcast %35 : vector<4x16x1xf32> to vector<4x16x16xf32>
    %37 = arith.mulf %32, %36 : vector<4x16x16xf32>
    %c0_14 = arith.constant 0 : index
    %c0_15 = arith.constant 0 : index
    %c0_16 = arith.constant 0 : index
    %c0_17 = arith.constant 0 : index
    %38 = vector.load %arg15[%c0_14, %c0_15, %c0_16, %c0_17] : memref<1x4x16x16xf32, #tpu.memory_space<vmem>>, vector<1x4x16x16xf32>
    %39 = vector.shape_cast %38 : vector<1x4x16x16xf32> to vector<4x16x16xf32>
    %40 = vector.shape_cast %37 : vector<4x16x16xf32> to vector<1x4x16x16xf32>
    tpu.vector_store %arg15[%c0_14, %c0_15, %c0_16, %c0_17], %40 {strides = array<i32>} : memref<1x4x16x16xf32, #tpu.memory_space<vmem>>, vector<1x4x16x16xf32>,
    "tpu.trace_start"() <{level = 10 : i32, message = "hqk,hkd->hqd"}> : () -> ()
    %cst_18 = arith.constant dense<0.000000e+00> : vector<4x16x32xf32>
    %41 = tpu.matmul %37, %18, %cst_18 {dimension_numbers = #tpu.dot_dimension_numbers<[2], [1], [1], [2], [0, 0, 0, 1, 1, 2], [0], [0]>} : vector<4x16x16xf32>, vector<4x16x32xf32>, vector<4x16x32xf32> -> vector<4x16x32xf32>
    "tpu.trace_stop"() : () -> ()
    %cst_19 = arith.constant dense<0.000000e+00> : vector<16x32xf32>
    %42 = vector.multi_reduction <add>, %41, %cst_19 [0] : vector<4x16x32xf32> to vector<16x32xf32>
    %c0_20 = arith.constant 0 : index
    %c0_21 = arith.constant 0 : index
    %43 = vector.load %arg6[%c0_20, %c0_21] : memref<32x32xf32, #tpu.memory_space<vmem>>, vector<32x32xf32>
    %cst_22 = arith.constant dense<0.000000e+00> : vector<16x32xf32>
    %44 = tpu.matmul %42, %43, %cst_22 {dimension_numbers = #tpu.dot_dimension_numbers<[1], [0], [0], [1], [0, 0, 1, 1], [], []>} : vector<16x32xf32>, vector<32x32xf32>, vector<16x32xf32> -> vector<16x32xf32>
    %c0_23 = arith.constant 0 : index
    %c0_24 = arith.constant 0 : index
    %45 = vector.load %arg7[%c0_23, %c0_24] : memref<1x32xf32, #tpu.memory_space<vmem>>, vector<1x32xf32>
    %46 = vector.broadcast %45 : vector<1x32xf32> to vector<16x32xf32>
    %47 = arith.addf %44, %46 : vector<16x32xf32>
    %c0_25 = arith.constant 0 : index
    %c0_26 = arith.constant 0 : index
    %48 = vector.load %arg8[%c0_25, %c0_26] : memref<32x64xf32, #tpu.memory_space<vmem>>, vector<32x64xf32>
    %cst_27 = arith.constant dense<0.000000e+00> : vector<16x64xf32>
    %49 = tpu.matmul %47, %48, %cst_27 {dimension_numbers = #tpu.dot_dimension_numbers<[1], [0], [0], [1], [0, 0, 1, 1], [], []>} : vector<16x32xf32>, vector<32x64xf32>, vector<16x64xf32> -> vector<16x64xf32>
    %c0_28 = arith.constant 0 : index
    %c0_29 = arith.constant 0 : index
    %50 = vector.load %arg9[%c0_28, %c0_29] : memref<1x64xf32, #tpu.memory_space<vmem>>, vector<1x64xf32>
    %51 = vector.broadcast %50 : vector<1x64xf32> to vector<16x64xf32>
    %52 = arith.addf %49, %51 : vector<16x64xf32>
    %cst_30 = arith.constant 5.000000e-01 : f32
    %53 = vector.broadcast %cst_30 : f32 to vector<16x64xf32>
    %54 = arith.mulf %53, %52 : vector<16x64xf32>
    %cst_31 = arith.constant 0.707106769 : f32
    %55 = vector.broadcast %cst_31 : f32 to vector<16x64xf32>
    %56 = arith.mulf %52, %55 : vector<16x64xf32>
    %57 = math.erf %56 : vector<16x64xf32>
    %cst_32 = arith.constant 1.000000e+00 : f32
    %58 = vector.broadcast %cst_32 : f32 to vector<16x64xf32>
    %59 = arith.addf %58, %57 : vector<16x64xf32>
    %60 = arith.mulf %54, %59 : vector<16x64xf32>
    %c0_33 = arith.constant 0 : index
    %c0_34 = arith.constant 0 : index
    %61 = vector.load %arg10[%c0_33, %c0_34] : memref<64x32xf32, #tpu.memory_space<vmem>>, vector<64x32xf32>
    %cst_35 = arith.constant dense<0.000000e+00> : vector<16x32xf32>
    %62 = tpu.matmul %60, %61, %cst_35 {dimension_numbers = #tpu.dot_dimension_numbers<[1], [0], [0], [1], [0, 0, 1, 1], [], []>} : vector<16x64xf32>, vector<64x32xf32>, vector<16x32xf32> -> vector<16x32xf32>
    %c0_36 = arith.constant 0 : index
    %c0_37 = arith.constant 0 : index
    %63 = vector.load %arg11[%c0_36, %c0_37] : memref<1x32xf32, #tpu.memory_space<vmem>>, vector<1x32xf32>
    %64 = vector.broadcast %63 : vector<1x32xf32> to vector<16x32xf32>
    %65 = arith.addf %62, %64 : vector<16x32xf32>
    %66 = arith.addf %65, %47 : vector<16x32xf32>
    %cst_38 = arith.constant dense<0.000000e+00> : vector<16xf32>
    %67 = vector.multi_reduction <add>, %66, %cst_38 [1] : vector<16x32xf32> to vector<16xf32>
    %68 = vector.shape_cast %67 : vector<16xf32> to vector<16x1xf32>
    %cst_39 = arith.constant 3.200000e+01 : f32
    %69 = vector.broadcast %cst_39 : f32 to vector<16x1xf32>
    %70 = arith.divf %68, %69 : vector<16x1xf32>
    %71 = vector.broadcast %70 : vector<16x1xf32> to vector<16x32xf32>
    %72 = arith.subf %66, %71 : vector<16x32xf32>
    %73 = arith.mulf %72, %72 : vector<16x32xf32>
    %cst_40 = arith.constant dense<0.000000e+00> : vector<16xf32>
    %74 = vector.multi_reduction <add>, %73, %cst_40 [1] : vector<16x32xf32> to vector<16xf32>
    %75 = vector.shape_cast %74 : vector<16xf32> to vector<16x1xf32>
    %cst_41 = arith.constant 3.200000e+01 : f32
    %76 = vector.broadcast %cst_41 : f32 to vector<16x1xf32>
    %77 = arith.divf %75, %76 : vector<16x1xf32>
    %78 = vector.broadcast %70 : vector<16x1xf32> to vector<16x32xf32>
    %79 = arith.subf %66, %78 : vector<16x32xf32>
    %cst_42 = arith.constant 9.99999974E-6 : f32
    %80 = vector.broadcast %cst_42 : f32 to vector<16x1xf32>
    %81 = arith.addf %77, %80 : vector<16x1xf32>
    %82 = math.rsqrt %81 : vector<16x1xf32>
    %83 = vector.broadcast %82 : vector<16x1xf32> to vector<16x32xf32>
    %84 = arith.mulf %79, %83 : vector<16x32xf32>
    %c0_43 = arith.constant 0 : index
    %c0_44 = arith.constant 0 : index
    %85 = vector.load %arg12[%c0_43, %c0_44] : memref<1x32xf32, #tpu.memory_space<vmem>>, vector<1x32xf32>
    %86 = vector.broadcast %85 : vector<1x32xf32> to vector<16x32xf32>
    %87 = arith.mulf %84, %86 : vector<16x32xf32>
    %c0_45 = arith.constant 0 : index
    %c0_46 = arith.constant 0 : index
    %88 = vector.load %arg13[%c0_45, %c0_46] : memref<1x32xf32, #tpu.memory_space<vmem>>, vector<1x32xf32>
    %89 = vector.broadcast %88 : vector<1x32xf32> to vector<16x32xf32>
    %90 = arith.addf %87, %89 : vector<16x32xf32>
    %c0_47 = arith.constant 0 : index
    %c0_48 = arith.constant 0 : index
    %91 = vector.load %arg14[%c0_47, %c0_48] : memref<16x32xf32, #tpu.memory_space<vmem>>, vector<16x32xf32>
    tpu.vector_store %arg14[%c0_47, %c0_48], %90 {strides = array<i32>} : memref<16x32xf32, #tpu.memory_space<vmem>>, vector<16x32xf32>,
    return
  }
  func.func @transform_0(%arg0: i32) -> (i32, i32) {
    %c0_i32 = arith.constant 0 : i32
    %c0_i32_0 = arith.constant 0 : i32
    return %arg0, %c0_i32 : i32, i32
  }
  func.func @transform_1(%arg0: i32) -> (i32, i32) {
    %c0_i32 = arith.constant 0 : i32
    %c0_i32_0 = arith.constant 0 : i32
    return %arg0, %c0_i32 : i32, i32
  }
  func.func @transform_2(%arg0: i32) -> (i32, i32, i32) {
    %c0_i32 = arith.constant 0 : i32
    %c0_i32_0 = arith.constant 0 : i32
    %c0_i32_1 = arith.constant 0 : i32
    %c0_i32_2 = arith.constant 0 : i32
    return %c0_i32, %c0_i32_0, %c0_i32_1 : i32, i32, i32
  }
  func.func @transform_3(%arg0: i32) -> (i32, i32) {
    %c0_i32 = arith.constant 0 : i32
    %c0_i32_0 = arith.constant 0 : i32
    %c0_i32_1 = arith.constant 0 : i32
    return %c0_i32, %c0_i32_0 : i32, i32
  }
  func.func @transform_4(%arg0: i32) -> (i32, i32) {
    %c0_i32 = arith.constant 0 : i32
    %c0_i32_0 = arith.constant 0 : i32
    %c0_i32_1 = arith.constant 0 : i32
    return %c0_i32, %c0_i32_0 : i32, i32
  }
  func.func @transform_5(%arg0: i32) -> (i32, i32) {
    %c0_i32 = arith.constant 0 : i32
    %c0_i32_0 = arith.constant 0 : i32
    %c0_i32_1 = arith.constant 0 : i32
    return %c0_i32, %c0_i32_0 : i32, i32
  }
  func.func @transform_6(%arg0: i32) -> (i32, i32) {
    %c0_i32 = arith.constant 0 : i32
    %c0_i32_0 = arith.constant 0 : i32
    %c0_i32_1 = arith.constant 0 : i32
    return %c0_i32, %c0_i32_0 : i32, i32
  }
  func.func @transform_7(%arg0: i32) -> (i32, i32) {
    %c0_i32 = arith.constant 0 : i32
    %c0_i32_0 = arith.constant 0 : i32
    %c0_i32_1 = arith.constant 0 : i32
    return %c0_i32, %c0_i32_0 : i32, i32
  }
  func.func @transform_8(%arg0: i32) -> (i32, i32) {
    %c0_i32 = arith.constant 0 : i32
    %c0_i32_0 = arith.constant 0 : i32
    %c0_i32_1 = arith.constant 0 : i32
    return %c0_i32, %c0_i32_0 : i32, i32
  }
  func.func @transform_9(%arg0: i32) -> (i32, i32) {
    %c0_i32 = arith.constant 0 : i32
    %c0_i32_0 = arith.constant 0 : i32
    %c0_i32_1 = arith.constant 0 : i32
    return %c0_i32, %c0_i32_0 : i32, i32
  }
  func.func @transform_10(%arg0: i32) -> (i32, i32) {
    %c0_i32 = arith.constant 0 : i32
    %c0_i32_0 = arith.constant 0 : i32
    %c0_i32_1 = arith.constant 0 : i32
    return %c0_i32, %c0_i32_0 : i32, i32
  }
  func.func @transform_11(%arg0: i32) -> (i32, i32) {
    %c0_i32 = arith.constant 0 : i32
    %c0_i32_0 = arith.constant 0 : i32
    %c0_i32_1 = arith.constant 0 : i32
    return %c0_i32, %c0_i32_0 : i32, i32
  }
  func.func @transform_12(%arg0: i32) -> (i32, i32) {
    %c0_i32 = arith.constant 0 : i32
    %c0_i32_0 = arith.constant 0 : i32
    %c0_i32_1 = arith.constant 0 : i32
    return %c0_i32, %c0_i32_0 : i32, i32
  }
  func.func @transform_13(%arg0: i32) -> (i32, i32) {
    %c0_i32 = arith.constant 0 : i32
    %c0_i32_0 = arith.constant 0 : i32
    return %arg0, %c0_i32 : i32, i32
  }
  func.func @transform_14(%arg0: i32) -> (i32, i32, i32, i32) {
    %c0_i32 = arith.constant 0 : i32
    %c0_i32_0 = arith.constant 0 : i32
    %c0_i32_1 = arith.constant 0 : i32
    %c0_i32_2 = arith.constant 0 : i32
    return %arg0, %c0_i32, %c0_i32_0, %c0_i32_1 : i32, i32, i32, i32
  }
}

</mosaic_0001>

<bundles_post_ra>
// kernel: tpu_custom_call.1
= control target key start
LH: loop header
LB: loop body
LE: loop exit
PB: predicated region body
PF: predicated region fallthrough
CT: control target
= control target key end

     0   :  { %20 = vsyncpa [#allocation3], 0  ;;  %s2374_s0 = inlined_call_operand.hbm [shape: f32[16,32], index: 0, kind: input, shape index: {}]   ;;  %s2375_s1 = inlined_call_operand.hbm [shape: f32[16,16], index: 1, kind: input, shape index: {}]   ;;  %s2376_s2 = inlined_call_operand.hbm [shape: f32[4,1,32], index: 2, kind: input, shape index: {}]   ;;  %s2377_s3 = inlined_call_operand.vmem [shape: f32[32,96], index: 3, kind: input, shape index: {}]   ;;  %s2378_s4 = inlined_call_operand.vmem [shape: f32[1,96], index: 4, kind: input, shape index: {}]   ;;  %s2379_s5 = inlined_call_operand.vmem [shape: f32[32,32], index: 5, kind: input, shape index: {}]   ;;  %s2380_s6 = inlined_call_operand.vmem [shape: f32[1,32], index: 6, kind: input, shape index: {}]   ;;  %s2381_s7 = inlined_call_operand.vmem [shape: f32[32,64], index: 7, kind: input, shape index: {}]   ;;  %s2382_s8 = inlined_call_operand.hbm [shape: f32[1,64], index: 8, kind: input, shape index: {}]   ;;  %s2383_s9 = inlined_call_operand.vmem [shape: f32[64,32], index: 9, kind: input, shape index: {}]   ;;  %s2384_s10 = inlined_call_operand.vmem [shape: f32[1,32], index: 10, kind: input, shape index: {}]   ;;  %s2385_s11 = inlined_call_operand.vmem [shape: f32[1,32], index: 11, kind: input, shape index: {}]   ;;  %s2386_s12 = inlined_call_operand.vmem [shape: f32[1,32], index: 12, kind: input, shape index: {}]   ;;  %s2387_s13 = inlined_call_operand.hbm [shape: f32[16,32], index: 13, kind: output, shape index: {0}]   ;;  %s2388_s14 = inlined_call_operand.hbm [shape: f32[1,4,16,16], index: 14, kind: output, shape index: {1}]  }
   0x1   :  { %21 = vsyncpa [#allocation6], 0 }
   0x2   :  { %22 = vsyncpa [#allocation9], 0 }
   0x3   :  { %23 = vsyncpa [#allocation4], 0 }
   0x4   :  { %24 = vsyncpa [#allocation12], 0  ;;  %s1955_s29 = smov [#allocation5]   ;;  %s1956_s15 = smov [#allocation2]  }
   0x5   :  { %s42_s30 = sshll.u32 %s1955_s29, 4  ;;  %s30_s16 = sshll.u32 %s1956_s15, 4  ;;  %s43_s30 = int_to_ptr.vmem [resolvable:$true] %s42_s30  ;;  %s2042_s16 = int_to_ptr.vmem [resolvable:$true] %s30_s16 }
   0x6   :  { %s1813_s19 = scalar_lea.hbm %s2375_s1, 256 }
   0x7   :  { %p1814_p0 = scmp.ne.s32.totalorder %s2375_s1, %s1813_s19  ;;  %p1817_p1 = scmp.lt.u32.totalorder %s1813_s19, %s2375_s1 }
   0x9   :  { %p1819_p2 = pnand %p1817_p1, %p1814_p0 }
   0xb   :  { %1822 = shalt.err (!%p1819_p2)
}
   0xc   :  { %s1823_s24 = scalar_lea.vmem %s43_s30, 256  ;;  %p1828_p4 = scmp.lt.s32.totalorder %s43_s30, %s43_s30 }
   0xd   :  { %p1824_p3 = scmp.ne.s32.totalorder %s43_s30, %s1823_s24  ;;  %p1829_p5 = scmp.lt.s32.totalorder %s1823_s24, %s1823_s24 }
   0xf   :  { %p1830_p6 = por %p1829_p5, %p1828_p4 }
  0x11   :  { %p1831_p7 = pnand %p1830_p6, %p1824_p3 }
  0x13   :  { %1834 = shalt.err (!%p1831_p7)
}
  0x14   :  { %s1957_s25 = smov 128   ;;  %s1958_s26 = smov 8  }
  0x15   :  { %48 = dma.hbm_to_vmem [thread:$0]  %s2375_s1, 256, %s43_s30, [#allocation6], %s1957_s25, %s1957_s25, %s1958_s26  }
  0x16   :  { %s1835_s17 = scalar_lea.hbm %s2374_s0, 256 }
  0x17   :  { %p1836_p8 = scmp.ne.s32.totalorder %s2374_s0, %s1835_s17  ;;  %p1839_p9 = scmp.lt.u32.totalorder %s1835_s17, %s2374_s0 }
  0x19   :  { %p1841_p10 = pnand %p1839_p9, %p1836_p8 }
  0x1b   :  { %1844 = shalt.err (!%p1841_p10)
}
  0x1c   :  { %s1845_s22 = scalar_lea.vmem %s2042_s16, 256  ;;  %p1850_p12 = scmp.lt.s32.totalorder %s2042_s16, %s2042_s16 }
  0x1d   :  { %p1846_p11 = scmp.ne.s32.totalorder %s2042_s16, %s1845_s22  ;;  %p1851_p13 = scmp.lt.s32.totalorder %s1845_s22, %s1845_s22 }
  0x1f   :  { %p1852_p0 = por %p1851_p13, %p1850_p12 }
  0x21   :  { %p1853_p1 = pnand %p1852_p0, %p1846_p11 }
  0x23   :  { %1856 = shalt.err (!%p1853_p1)
}
  0x24   :  { %36 = dma.hbm_to_vmem [thread:$0]  %s2374_s0, 256, %s2042_s16, [#allocation3], %s1957_s25, %s1957_s25, %s1958_s26  }
  0x25   :  { %s1959_s23 = smov [#allocation7]   ;;  %s1857_s29 = scalar_lea.hbm %s2376_s2, 64 }
  0x26   :  { %s54_s24 = sshll.u32 %s1959_s23, 4  ;;  %p1858_p2 = scmp.ne.s32.totalorder %s2376_s2, %s1857_s29  ;;  %s55_s24 = int_to_ptr.vmem [resolvable:$true] %s54_s24 }
  0x27   :  { %p1861_p3 = scmp.lt.u32.totalorder %s1857_s29, %s2376_s2 }
  0x29   :  { %p1863_p4 = pnand %p1861_p3, %p1858_p2 }
  0x2b   :  { %1866 = shalt.err (!%p1863_p4)
}
  0x2c   :  { %s1867_s20 = scalar_lea.vmem %s55_s24, 64  ;;  %p1872_p6 = scmp.lt.s32.totalorder %s55_s24, %s55_s24 }
  0x2d   :  { %p1868_p5 = scmp.ne.s32.totalorder %s55_s24, %s1867_s20  ;;  %p1873_p7 = scmp.lt.s32.totalorder %s1867_s20, %s1867_s20 }
  0x2f   :  { %p1874_p8 = por %p1873_p7, %p1872_p6 }
  0x31   :  { %p1875_p9 = pnand %p1874_p8, %p1868_p5 }
  0x33   :  { %1878 = shalt.err (!%p1875_p9)
}
  0x34   :  { %s1960_s0 = smov 16   ;;  %s1961_s16 = smov 1  }
  0x35   :  { %60 = dma.hbm_to_vmem [thread:$0]  %s2376_s2, 64, %s55_s24, [#allocation6], %s1960_s0, %s1960_s0, %s1961_s16  }
  0x36   :  { %s1962_s1 = smov [#allocation8]   ;;  %s1879_s28 = scalar_lea.hbm %s2382_s8, 16 }
  0x37   :  { %s77_s30 = sshll.u32 %s1962_s1, 4  ;;  %p1880_p10 = scmp.ne.s32.totalorder %s2382_s8, %s1879_s28  ;;  %s78_s30 = int_to_ptr.vmem [resolvable:$true] %s77_s30 }
  0x38   :  { %p1883_p11 = scmp.lt.u32.totalorder %s1879_s28, %s2382_s8 }
  0x3a   :  { %p1885_p12 = pnand %p1883_p11, %p1880_p10 }
  0x3c   :  { %1888 = shalt.err (!%p1885_p12)
}
  0x3d   :  { %s1889_s19 = scalar_lea.vmem %s78_s30, 16  ;;  %s1893_s2 = scalar_lea.vmem %s78_s30, 32 }
  0x3e   :  { %p1890_p13 = scmp.ne.s32.totalorder %s78_s30, %s1889_s19  ;;  %p1894_p0 = scmp.lt.s32.totalorder %s78_s30, %s78_s30 }
  0x3f   :  { %p1895_p1 = scmp.lt.s32.totalorder %s1893_s2, %s1889_s19 }
  0x41   :  { %p1896_p2 = por %p1895_p1, %p1894_p0 }
  0x43   :  { %p1897_p3 = pnand %p1896_p2, %p1890_p13 }
  0x45   :  { %1900 = shalt.err (!%p1897_p3)
}
  0x46   :  { %80 = dma.hbm_to_vmem [thread:$0]  %s2382_s8, 16, %s78_s30, [#allocation9]  }
  0x47   :  { %1945 = dma.done.wait [#allocation3], 256  }
  0x48   :  { %1946 = vsyncadd [#allocation3], 4294967040 }
  0x49   :  { %1947 = dma.done.wait [#allocation6], 320  }
  0x4a   :  { %1948 = vsyncadd [#allocation6], 4294966976 }
  0x4b   :  { %1949 = dma.done.wait [#allocation9], 16  }
  0x4c   :  { %1950 = vsyncadd [#allocation9], 4294967280  ;;  %vm116_vm0 = vcmask 261120   ;;  %v105_v0 = vld [vmem:[%s2377_s3] sm:$0xff]  ;;  %v106_v1 = vld [vmem:[%s2377_s3 + $0x8] sm:$0xff]  ;;  %vm604_vm2 = vcmask 130048  }
  0x4d   :  { %v107_v2 = vld [vmem:[%s2377_s3 + $0x10] sm:$0xff]  ;;  %v1656_v3 = vpack.c.bf16 %v106_v1, %v105_v0  ;;  %v108_v4 = vld [vmem:[%s2377_s3 + $0x18] sm:$0xff]  ;;  %v101_v5 = vld [vmem:[#allocation2] sm:$0xff]  ;;  %s1963_s3 = smov 96   ;;  %vm1280_vm3 = vcmask 523264  }
  0x4e   :  { %v1660_v6 = vpack.c.bf16 %v108_v4, %v107_v2  ;;  %1556 = vmatprep.mubr.msk.f32.mxu1 %vm116_vm0, %v101_v5  ;;  %v102_v7 = vld [vmem:[#allocation2 + $0x8] sm:$0xff]  ;;  %v1446_v8 = vld [vmem:[%s2378_s4] ss:$0 sm:$0xff]  ;;  %v2124_v13 = vld [vmem:[#allocation7 + $0x1] ss:$0 sm:$0xff]  ;;  %s1964_s4 = smov 64  }
  0x4f   :  { %1657 = vmatprep.subr.bf16.mxu1 %v1656_v3  ;;  %v2122_v12 = vld [vmem:[#allocation7] ss:$0 sm:$0xff]  ;;  %vm2138_vm1 = vmpackc.low %vm116_vm0, %vm116_vm0  ;;  %v1451_v23 = vld [vmem:[#allocation7 + $0x2] ss:$0 sm:$0xff] }
  0x50   :  { %1659 = vmatpush3.bf16.msra.mxu1 %v1656_v3  ;;  %v1452_v24 = vld [vmem:[#allocation7 + $0x3] ss:$0 sm:$0xff]  ;;  %v104_v33 = vld [vmem:[#allocation5 + $0x8] sm:$0xff]  ;;  %v103_v34 = vld [vmem:[#allocation5] sm:$0xff] }
  0x51   :  { %1661 = vmatprep.subr.bf16.mxu1 %v1660_v6 }
  0x54   :  { %1663 = vmatpush3.bf16.msra.mxu1 %v1660_v6 }
  0x57   :  { %1557 = vmatmul.mubr.msk.f32.vlgmr.msra.gmra.mrb[0].mxu1 %vm116_vm0, %v102_v7 }
 0x12a   :  { %v1558_v9 = vpop.f32.mrb[0].mxu1 }
 0x12b   :  { %v2120_v10 = vadd.f32 %v1558_v9, %v1446_v8  ;;  %v189_v11 = vpop.f32.mrb[1].mxu1 }
 0x12c   :  { %v2126_v14 = vadd.f32 %v1446_v8, %v189_v11 }
 0x12d   :  { %v229_v25 = vmul.f32 %v2124_v13, %v2120_v10  ;;  %v227_v26 = vmul.f32 %v2122_v12, %v2120_v10  ;;  %v231_v29 = vmul.f32 %v1451_v23, %v2120_v10  ;;  %v233_v30 = vmul.f32 %v1452_v24, %v2120_v10 }
 0x12e   :  { %v1748_v15 = vpack.i.bf16 %v2120_v10, %v2126_v14  ;;  %v226_v16 = vmul.f32 %v2122_v12, %v2126_v14  ;;  %v228_v17 = vmul.f32 %v2124_v13, %v2126_v14  ;;  %v230_v27 = vmul.f32 %v1451_v23, %v2126_v14 }
 0x12f   :  { %v232_v28 = vmul.f32 %v1452_v24, %v2126_v14 }
 0x130   :  { %1749 = vrot.lane.b32.xlu0 %v1748_v15, %s1963_s3  ;;  %1563 = vmatprep.mubr.msk.f32.mxu1 %vm116_vm0, %v226_v16 }
 0x131   :  { %1570 = vmatprep.mubr.msk.f32.mxu0 %vm116_vm0, %v228_v17 }
 0x1a2   :  { %v1750_v18 = vpop.permute.xlu0 %1749 }
 0x1a3   :  { %v1752_v19 = vunpack.i.h.bf16 %v1750_v18  ;;  %v1751_v20 = vunpack.i.l.bf16 %v1750_v18 }
 0x1a5   :  { %v1664_v22 = vpack.c.bf16 %v1752_v19, %v1751_v20 }
 0x1a7   :  { %1666 = vmatprep.subr.msk.bf16.mxu1 %vm2138_vm1, %v1664_v22  ;;  %1672 = vmatprep.subr.msk.bf16.mxu0 %vm2138_vm1, %v1664_v22 }
 0x1a8   :  { %1669 = vmatpush3.bf16.xpose.msk.msra.mxu1 %vm2138_vm1, %v1664_v22  ;;  %1675 = vmatpush3.bf16.xpose.msk.msra.mxu0 %vm2138_vm1, %v1664_v22 }
 0x1a9   :  { %1678 = vmatprep.subr.msk.bf16.mxu1 %vm2138_vm1, %v1664_v22  ;;  %1684 = vmatprep.subr.msk.bf16.mxu0 %vm2138_vm1, %v1664_v22 }
 0x1af   :  { %1564 = vmatmul.mubr.msk.f32.vlgmr.msra.gmra.mrb[2].mxu1 %vm116_vm0, %v227_v26  ;;  %1571 = vmatmul.mubr.msk.f32.vlgmr.msra.gmra.mrb[0].mxu0 %vm116_vm0, %v229_v25 }
 0x1b0   :  { %1681 = vmatpush3.bf16.xpose.msk.msra.mxu1 %vm2138_vm1, %v1664_v22  ;;  %1577 = vmatprep.mubr.msk.f32.mxu1 %vm116_vm0, %v230_v27 }
 0x1b1   :  { %1687 = vmatpush3.bf16.xpose.msk.msra.mxu0 %vm2138_vm1, %v1664_v22  ;;  %1584 = vmatprep.mubr.msk.f32.mxu0 %vm116_vm0, %v232_v28 }
 0x1b7   :  { %1578 = vmatmul.mubr.msk.f32.vlgmr.msra.gmra.mrb[4].mxu1 %vm116_vm0, %v231_v29 }
 0x1b8   :  { %1585 = vmatmul.mubr.msk.f32.vlgmr.msra.gmra.mrb[2].mxu0 %vm116_vm0, %v233_v30 }
 0x282   :  { %v1565_v31 = vpop.f32.mrb[2].mxu1  ;;  %v1572_v32 = vpop.f32.mrb[0].mxu0 }
 0x283   :  { %v589_v35 = vmul.f32 0.35355338, %v1565_v31  ;;  %v591_v36 = vmul.f32 0.35355338, %v1572_v32  ;;  %v336_v37 = vpop.f32.mrb[3].mxu1  ;;  %v417_v38 = vpop.f32.mrb[1].mxu0 }
 0x284   :  { %v588_v39 = vmul.f32 0.35355338, %v336_v37  ;;  %v590_v56 = vmul.f32 0.35355338, %v417_v38 }
 0x285   :  { %v597_v40 = vadd.f32 %v589_v35, %v104_v33  ;;  %v599_v43 = vadd.f32 %v591_v36, %v104_v33 }
 0x286   :  { %v596_v41 = vadd.f32 %v588_v39, %v103_v34  ;;  %v598_v58 = vadd.f32 %v590_v56, %v103_v34 }
 0x287   :  { %v608_v42 = vsel %vm604_vm2, %v597_v40, -inf  ;;  %v614_v48 = vsel %vm604_vm2, %v599_v43, -inf }
 0x288   :  { %609 = vmax.xlane.f32.xlu1 %v608_v42  ;;  %v605_v44 = vsel %vm604_vm2, %v596_v41, -inf  ;;  %v611_v59 = vsel %vm604_vm2, %v598_v58, -inf }
 0x289   :  { %606 = vmax.xlane.f32.xlu0 %v605_v44 }
 0x28a   :  { %v1579_v45 = vpop.f32.mrb[4].mxu1 }
 0x28b   :  { %v1586_v46 = vpop.f32.mrb[2].mxu0  ;;  %v498_v47 = vpop.f32.mrb[5].mxu1  ;;  %v593_v57 = vmul.f32 0.35355338, %v1579_v45 }
 0x28c   :  { %v595_v49 = vmul.f32 0.35355338, %v1586_v46  ;;  %v592_v50 = vmul.f32 0.35355338, %v498_v47  ;;  %v579_v51 = vpop.f32.mrb[3].mxu0  ;;  %615 = vmax.xlane.f32.xlu1 %v614_v48 }
 0x28d   :  { %v594_v52 = vmul.f32 0.35355338, %v579_v51  ;;  %v601_v60 = vadd.f32 %v593_v57, %v104_v33 }
 0x28e   :  { %v2175_v53 = vadd.f32 %v595_v49, %v104_v33  ;;  %v2177_v54 = vadd.f32 %v592_v50, %v103_v34 }
 0x28f   :  { %v2179_v55 = vadd.f32 %v594_v52, %v103_v34  ;;  %v620_v61 = vsel %vm604_vm2, %v601_v60, -inf }
 0x290   :  { %v626_v62 = vsel %vm604_vm2, %v2175_v53, -inf  ;;  %v617_v63 = vsel %vm604_vm2, %v2177_v54, -inf }
 0x291   :  { %v623_v0 = vsel %vm604_vm2, %v2179_v55, -inf }
 0x29d   :  { %234 = vrot.lane.b32.xlu1 %v2122_v12, %s1964_s4 }
 0x29f   :  { %236 = vrot.lane.b32.xlu0 %v2124_v13, %s1964_s4 }
 0x2c1   :  { %612 = vmax.xlane.f32.xlu1 %v611_v59 }
 0x2c5   :  { %621 = vmax.xlane.f32.xlu1 %v620_v61 }
 0x2c9   :  { %627 = vmax.xlane.f32.xlu1 %v626_v62 }
 0x2cd   :  { %618 = vmax.xlane.f32.xlu1 %v617_v63 }
 0x2d1   :  { %624 = vmax.xlane.f32.xlu1 %v623_v0 }
 0x2e2   :  { %238 = vrot.lane.b32.xlu1 %v1451_v23, %s1964_s4 }
 0x2e6   :  { %240 = vrot.lane.b32.xlu1 %v1452_v24, %s1964_s4 }
 0x315   :  { %v610_v1 = vpop.xlane.xlu1 %609 }
 0x316   :  { %v607_v2 = vpop.xlane.xlu0 %606  ;;  %v630_v13 = vsub.f32 %v597_v40, %v610_v1 }
 0x317   :  { %v629_v17 = vsub.f32 %v596_v41, %v607_v2 }
 0x318   :  { %v639_v16 = vmul.f32 1.442695, %v630_v13 }
 0x319   :  { %v616_v3 = vpop.xlane.xlu1 %615  ;;  %v637_v19 = vmul.f32 1.442695, %v629_v17 }
 0x31a   :  { %v237_v4 = vpop.permute.xlu0 %236  ;;  %v632_v15 = vsub.f32 %v599_v43, %v616_v3  ;;  %1773 = vpow2.f32 %v639_v16 }
 0x31b   :  { %v248_v5 = vmul.f32 %v237_v4, %v2126_v14  ;;  %v249_v6 = vmul.f32 %v237_v4, %v2120_v10 }
 0x31c   :  { %v643_v18 = vmul.f32 1.442695, %v632_v15 }
 0x31d   :  { %v1758_v7 = vpack.i.bf16 %v249_v6, %v248_v5  ;;  %v235_v8 = vpop.permute.xlu1 %234 }
 0x31e   :  { %v246_v9 = vmul.f32 %v235_v8, %v2126_v14  ;;  %v247_v11 = vmul.f32 %v235_v8, %v2120_v10  ;;  %1775 = vpow2.f32 %v643_v18 }
 0x31f   :  { %1759 = vrot.lane.b32.xlu1 %v1758_v7, %s1964_s4  ;;  %1777 = vpow2.f32 %v637_v19 }
 0x320   :  { %v1753_v12 = vpack.i.bf16 %v247_v11, %v246_v9 }
 0x322   :  { %1754 = vrot.lane.b32.xlu0 %v1753_v12, %s1964_s4 }
 0x324   :  { %v2201_v20 = vpop.eup %1773 }
 0x325   :  { %v656_v22 = vsel %vm604_vm2, %v2201_v20, 0.0 }
 0x328   :  { %v2203_v21 = vpop.eup %1775 }
 0x329   :  { %v662_v23 = vsel %vm604_vm2, %v2203_v21, 0.0  ;;  %v2209_v24 = vpop.eup %1777 }
 0x32a   :  { %v653_v25 = vsel %vm604_vm2, %v2209_v24, 0.0 }
 0x341   :  { %657 = vadd.xlane.f32.xlu0 %v656_v22 }
 0x343   :  { %663 = vadd.xlane.f32.xlu1 %v662_v23 }
 0x347   :  { %654 = vadd.xlane.f32.xlu1 %v653_v25 }
 0x34e   :  { %v613_v26 = vpop.xlane.xlu1 %612 }
 0x34f   :  { %v631_v27 = vsub.f32 %v598_v58, %v613_v26 }
 0x351   :  { %v641_v28 = vmul.f32 1.442695, %v631_v27 }
 0x352   :  { %v622_v29 = vpop.xlane.xlu1 %621 }
 0x353   :  { %1779 = vpow2.f32 %v641_v28  ;;  %v634_v30 = vsub.f32 %v601_v60, %v622_v29 }
 0x355   :  { %v647_v31 = vmul.f32 1.442695, %v634_v30 }
 0x356   :  { %v628_v32 = vpop.xlane.xlu1 %627 }
 0x357   :  { %1781 = vpow2.f32 %v647_v31  ;;  %v636_v33 = vsub.f32 %v2175_v53, %v628_v32 }
 0x359   :  { %v651_v34 = vmul.f32 1.442695, %v636_v33 }
 0x35a   :  { %v619_v35 = vpop.xlane.xlu1 %618 }
 0x35b   :  { %1783 = vpow2.f32 %v651_v34  ;;  %v633_v36 = vsub.f32 %v2177_v54, %v619_v35  ;;  %v1071_v35 = vld [vmem:[%s2379_s5] sm:$0xff] }
 0x35d   :  { %v2215_v37 = vpop.eup %1779  ;;  %v645_v38 = vmul.f32 1.442695, %v633_v36  ;;  %v1072_v36 = vld [vmem:[%s2379_s5 + $0x8] sm:$0xff] }
 0x35e   :  { %v625_v39 = vpop.xlane.xlu1 %624  ;;  %v659_v40 = vsel %vm604_vm2, %v2215_v37, 0.0 }
 0x35f   :  { %1785 = vpow2.f32 %v645_v38  ;;  %v635_v41 = vsub.f32 %v2179_v55, %v625_v39  ;;  %660 = vadd.xlane.f32.xlu0 %v659_v40  ;;  %v1073_v38 = vld [vmem:[%s2379_s5 + $0x10] sm:$0xff]  ;;  %v1074_v39 = vld [vmem:[%s2379_s5 + $0x18] sm:$0xff] }
 0x360   :  { %v1708_v40 = vpack.c.bf16 %v1074_v39, %v1073_v38 }
 0x361   :  { %v2220_v42 = vpop.eup %1781  ;;  %v649_v43 = vmul.f32 1.442695, %v635_v41  ;;  %v1163_v41 = vld [vmem:[%s2381_s7] sm:$0xff] }
 0x362   :  { %v668_v44 = vsel %vm604_vm2, %v2220_v42, 0.0  ;;  %v239_v51 = vpop.permute.xlu1 %238 }
 0x363   :  { %1787 = vpow2.f32 %v649_v43  ;;  %669 = vadd.xlane.f32.xlu1 %v668_v44  ;;  %v250_v52 = vmul.f32 %v239_v51, %v2126_v14  ;;  %v251_v53 = vmul.f32 %v239_v51, %v2120_v10 }
 0x365   :  { %v2224_v45 = vpop.eup %1783  ;;  %v1763_v54 = vpack.i.bf16 %v251_v53, %v250_v52 }
 0x366   :  { %v674_v46 = vsel %vm604_vm2, %v2224_v45, 0.0  ;;  %v241_v55 = vpop.permute.xlu1 %240 }
 0x367   :  { %675 = vadd.xlane.f32.xlu1 %v674_v46  ;;  %v252_v56 = vmul.f32 %v241_v55, %v2126_v14  ;;  %v253_v57 = vmul.f32 %v241_v55, %v2120_v10 }
 0x369   :  { %v2228_v47 = vpop.eup %1785  ;;  %v1768_v58 = vpack.i.bf16 %v253_v57, %v252_v56 }
 0x36a   :  { %v665_v48 = vsel %vm604_vm2, %v2228_v47, 0.0 }
 0x36b   :  { %666 = vadd.xlane.f32.xlu0 %v665_v48 }
 0x36d   :  { %v2232_v49 = vpop.eup %1787 }
 0x36e   :  { %v671_v50 = vsel %vm604_vm2, %v2232_v49, 0.0 }
 0x36f   :  { %672 = vadd.xlane.f32.xlu0 %v671_v50 }
 0x378   :  { %1764 = vrot.lane.b32.xlu1 %v1763_v54, %s1964_s4 }
 0x385   :  { %1769 = vrot.lane.b32.xlu0 %v1768_v58, %s1964_s4 }
 0x391   :  { %v1760_v59 = vpop.permute.xlu1 %1759 }
 0x392   :  { %v1762_v61 = vunpack.i.h.bf16 %v1760_v59  ;;  %v1761_v62 = vunpack.i.l.bf16 %v1760_v59 }
 0x394   :  { %v1755_v60 = vpop.permute.xlu0 %1754  ;;  %v1692_v2 = vpack.c.bf16 %v1762_v61, %v1761_v62 }
 0x395   :  { %v1757_v63 = vunpack.i.h.bf16 %v1755_v60  ;;  %v1756_v0 = vunpack.i.l.bf16 %v1755_v60 }
 0x397   :  { %v1688_v1 = vpack.c.bf16 %v1757_v63, %v1756_v0 }
 0x399   :  { %1689 = vmatprep.subr.bf16.mxu1 %v1688_v1 }
 0x39a   :  { %1691 = vmatpush3.bf16.msra.mxu1 %v1688_v1 }
 0x39b   :  { %1693 = vmatprep.subr.bf16.mxu1 %v1692_v2 }
 0x3ce   :  { %v658_v3 = vpop.xlane.xlu0 %657 }
 0x3cf   :  { %1789 = vrcp.f32 %v658_v3  ;;  %v1166_v3 = vld [vmem:[%s2381_s7 + $0x18] sm:$0xff] }
 0x3d0   :  { %v664_v4 = vpop.xlane.xlu1 %663 }
 0x3d1   :  { %1791 = vrcp.f32 %v664_v4 }
 0x3d4   :  { %v655_v14 = vpop.xlane.xlu1 %654 }
 0x3d5   :  { %1793 = vrcp.f32 %v655_v14  ;;  %v1477_v14 = vld [vmem:[%s2380_s6] ss:$0 sm:$0xff] }
 0x3d9   :  { %v1790_v10 = vpop.eup %1789 }
 0x3da   :  { %v686_v5 = vmul.f32 %v1790_v10, %v2201_v20 }
 0x3db   :  { %v1792_v6 = vpop.eup %1791 }
 0x3dc   :  { %694 = vst.msk [vmem:[#allocation11 + $0x8] sm:$0xff] %vm604_vm2, %v686_v5  ;;  %v688_v7 = vmul.f32 %v1792_v6, %v2203_v21 }
 0x3de   :  { %696 = vst.msk [vmem:[#allocation11 + $0x18] sm:$0xff] %vm604_vm2, %v688_v7 }
 0x3df   :  { %v1794_v8 = vpop.eup %1793 }
 0x3e0   :  { %v685_v9 = vmul.f32 %v1794_v8, %v2209_v24  ;;  %v1265_v8 = vld [vmem:[%s2383_s9] sm:$0xff] }
 0x3e2   :  { %693 = vst.msk [vmem:[#allocation11] sm:$0xff] %vm604_vm2, %v685_v9  ;;  %1591 = vmatprep.mubr.msk.f32.mxu1 %vm604_vm2, %v685_v9  ;;  %v1266_v9 = vld [vmem:[%s2383_s9 + $0x8] sm:$0xff] }
 0x3e3   :  { %1592 = vmatmul.mubr.msk.f32.vlgmr.msra.gmra.mrb[6].mxu1 %vm604_vm2, %v686_v5 }
 0x3e4   :  { %1695 = vmatpush3.bf16.msra.mxu1 %v1692_v2  ;;  %v1165_v2 = vld [vmem:[%s2381_s7 + $0x10] sm:$0xff] }
 0x3e5   :  { %v1716_v4 = vpack.c.bf16 %v1166_v3, %v1165_v2 }
 0x3ec   :  { %v661_v11 = vpop.xlane.xlu0 %660 }
 0x3ed   :  { %1795 = vrcp.f32 %v661_v11  ;;  %v1720_v11 = vpack.c.bf16 %v1266_v9, %v1265_v8 }
 0x3f0   :  { %v670_v12 = vpop.xlane.xlu1 %669 }
 0x3f1   :  { %1797 = vrcp.f32 %v670_v12  ;;  %v1267_v12 = vld [vmem:[%s2383_s9 + $0x10] sm:$0xff] }
 0x3f4   :  { %v676_v13 = vpop.xlane.xlu1 %675 }
 0x3f5   :  { %1799 = vrcp.f32 %v676_v13  ;;  %v1268_v13 = vld [vmem:[%s2383_s9 + $0x18] sm:$0xff] }
 0x3f7   :  { %v1796_v15 = vpop.eup %1795 }
 0x3f8   :  { %v667_v16 = vpop.xlane.xlu0 %666  ;;  %v1765_v17 = vpop.permute.xlu1 %1764  ;;  %v687_v18 = vmul.f32 %v1796_v15, %v2215_v37  ;;  %v1704_v37 = vpack.c.bf16 %v1072_v36, %v1071_v35  ;;  %v1724_v15 = vpack.c.bf16 %v1268_v13, %v1267_v12 }
 0x3f9   :  { %1801 = vrcp.f32 %v667_v16  ;;  %v1767_v19 = vunpack.i.h.bf16 %v1765_v17  ;;  %v1766_v20 = vunpack.i.l.bf16 %v1765_v17  ;;  %v1269_v16 = vld [vmem:[%s2383_s9 + $0x20] sm:$0xff]  ;;  %v1270_v17 = vld [vmem:[%s2383_s9 + $0x28] sm:$0xff] }
 0x3fa   :  { %695 = vst.msk [vmem:[#allocation11 + $0x10] sm:$0xff] %vm604_vm2, %v687_v18  ;;  %1598 = vmatprep.mubr.msk.f32.mxu1 %vm604_vm2, %v687_v18  ;;  %v1728_v18 = vpack.c.bf16 %v1270_v17, %v1269_v16 }
 0x3fb   :  { %v1798_v21 = vpop.eup %1797  ;;  %v1696_v22 = vpack.c.bf16 %v1767_v19, %v1766_v20  ;;  %1599 = vmatmul.mubr.msk.f32.vlgmr.msra.gmra.mrb[8].mxu1 %vm604_vm2, %v688_v7  ;;  %v1271_v19 = vld [vmem:[%s2383_s9 + $0x30] sm:$0xff]  ;;  %v1272_v20 = vld [vmem:[%s2383_s9 + $0x38] sm:$0xff] }
 0x3fc   :  { %v690_v23 = vmul.f32 %v1798_v21, %v2220_v42  ;;  %v673_v24 = vpop.xlane.xlu0 %672  ;;  %v1164_v42 = vld [vmem:[%s2381_s7 + $0x8] sm:$0xff]  ;;  %v1732_v21 = vpack.c.bf16 %v1272_v20, %v1271_v19 }
 0x3fd   :  { %1803 = vrcp.f32 %v673_v24  ;;  %1697 = vmatprep.subr.bf16.mxu0 %v1696_v22  ;;  %v1712_v43 = vpack.c.bf16 %v1164_v42, %v1163_v41 }
 0x3fe   :  { %698 = vst.msk [vmem:[#allocation11 + $0x28] sm:$0xff] %vm604_vm2, %v690_v23  ;;  %1699 = vmatpush3.bf16.msra.mxu0 %v1696_v22  ;;  %v1480_v22 = vld [vmem:[#allocation8] ss:$0 sm:$0xff] }
 0x3ff   :  { %v1800_v25 = vpop.eup %1799  ;;  %1705 = vmatprep.subr.bf16.mxu0 %v1704_v37 }
 0x400   :  { %v692_v26 = vmul.f32 %v1800_v25, %v2224_v45  ;;  %v1770_v27 = vpop.permute.xlu0 %1769 }
 0x401   :  { %v1772_v28 = vunpack.i.h.bf16 %v1770_v27  ;;  %v1771_v29 = vunpack.i.l.bf16 %v1770_v27 }
 0x402   :  { %700 = vst.msk [vmem:[#allocation11 + $0x38] sm:$0xff] %vm604_vm2, %v692_v26 }
 0x403   :  { %v1802_v30 = vpop.eup %1801  ;;  %v1700_v31 = vpack.c.bf16 %v1772_v28, %v1771_v29 }
 0x404   :  { %v689_v32 = vmul.f32 %v1802_v30, %v2228_v47 }
 0x405   :  { %1701 = vmatprep.subr.bf16.mxu1 %v1700_v31 }
 0x406   :  { %697 = vst.msk [vmem:[#allocation11 + $0x20] sm:$0xff] %vm604_vm2, %v689_v32  ;;  %1605 = vmatprep.mubr.msk.f32.mxu0 %vm604_vm2, %v689_v32  ;;  %1703 = vmatpush3.bf16.msra.mxu1 %v1700_v31 }
 0x407   :  { %v1804_v33 = vpop.eup %1803  ;;  %1606 = vmatmul.mubr.msk.f32.vlgmr.msra.gmra.mrb[4].mxu0 %vm604_vm2, %v690_v23  ;;  %1713 = vmatprep.subr.bf16.mxu1 %v1712_v43 }
 0x408   :  { %v691_v34 = vmul.f32 %v1804_v33, %v2232_v49  ;;  %1707 = vmatpush3.bf16.msra.mxu0 %v1704_v37  ;;  %v1483_v37 = vld [vmem:[%s2384_s10] ss:$0 sm:$0xff]  ;;  %s1965_s10 = smov [#allocation11]  }
 0x409   :  { %1709 = vmatprep.subr.bf16.mxu0 %v1708_v40  ;;  %s1428_s5 = sshll.u32 %s1965_s10, 4  ;;  %s1429_s5 = int_to_ptr.vmem [resolvable:$true] %s1428_s5 }
 0x40a   :  { %699 = vst.msk [vmem:[#allocation11 + $0x30] sm:$0xff] %vm604_vm2, %v691_v34  ;;  %1612 = vmatprep.mubr.msk.f32.mxu1 %vm604_vm2, %v691_v34  ;;  %s1901_s1 = scalar_lea.vmem %s1429_s5, 1024  ;;  %p1906_p5 = scmp.lt.s32.totalorder %s1429_s5, %s1429_s5 }
 0x40b   :  { %1613 = vmatmul.mubr.msk.f32.vlgmr.msra.gmra.mrb[10].mxu1 %vm604_vm2, %v692_v26  ;;  %p1902_p4 = scmp.ne.s32.totalorder %s1429_s5, %s1901_s1  ;;  %p1907_p6 = scmp.lt.s32.totalorder %s1901_s1, %s1901_s1 }
 0x40c   :  { %1711 = vmatpush3.bf16.msra.mxu0 %v1708_v40  ;;  %1715 = vmatpush3.bf16.msra.mxu1 %v1712_v43 }
 0x40d   :  { %1717 = vmatprep.subr.bf16.mxu1 %v1716_v4  ;;  %1721 = vmatprep.subr.bf16.mxu0 %v1720_v11  ;;  %p1908_p7 = por %p1907_p6, %p1906_p5 }
 0x40f   :  { %p1909_p8 = pnand %p1908_p7, %p1902_p4 }
 0x410   :  { %1719 = vmatpush3.bf16.msra.mxu1 %v1716_v4 }
 0x4b6   :  { %v1593_v44 = vpop.f32.mrb[6].mxu1 }
 0x4b7   :  { %v781_v45 = vpop.f32.mrb[7].mxu1  ;;  %v1064_v47 = vsel %vm116_vm0, %v1593_v44, 0.0 }
 0x4b8   :  { %v1057_v50 = vsel %vm116_vm0, %v781_v45, 0.0 }
 0x4ce   :  { %v1600_v46 = vpop.f32.mrb[8].mxu1 }
 0x4cf   :  { %v1065_v48 = vsel %vm116_vm0, %v1600_v46, 0.0  ;;  %v870_v49 = vpop.f32.mrb[9].mxu1 }
 0x4d0   :  { %v1066_v51 = vadd.f32 %v1065_v48, %v1064_v47  ;;  %v1058_v52 = vsel %vm116_vm0, %v870_v49, 0.0 }
 0x4d1   :  { %v1059_v53 = vadd.f32 %v1058_v52, %v1057_v50 }
 0x4da   :  { %v1607_v54 = vpop.f32.mrb[4].mxu0 }
 0x4db   :  { %v1067_v55 = vsel %vm116_vm0, %v1607_v54, 0.0  ;;  %v959_v56 = vpop.f32.mrb[5].mxu0 }
 0x4dc   :  { %v1068_v57 = vadd.f32 %v1067_v55, %v1066_v51  ;;  %v1060_v58 = vsel %vm116_vm0, %v959_v56, 0.0 }
 0x4dd   :  { %v1061_v59 = vadd.f32 %v1060_v58, %v1059_v53 }
 0x4de   :  { %v1614_v60 = vpop.f32.mrb[10].mxu1 }
 0x4df   :  { %v1069_v61 = vsel %vm116_vm0, %v1614_v60, 0.0  ;;  %v1048_v62 = vpop.f32.mrb[11].mxu1 }
 0x4e0   :  { %v1070_v63 = vadd.f32 %v1069_v61, %v1068_v57  ;;  %v1062_v0 = vsel %vm116_vm0, %v1048_v62, 0.0 }
 0x4e1   :  { %v1063_v1 = vadd.f32 %v1062_v0, %v1061_v59 }
 0x4e3   :  { %1623 = vmatprep.mubr.msk.f32.mxu0 %vm116_vm0, %v1063_v1 }
 0x4e4   :  { %1624 = vmatmul.mubr.msk.f32.vlgmr.msra.gmra.mrb[6].mxu0 %vm116_vm0, %v1070_v63 }
 0x4e5   :  { %1723 = vmatpush3.bf16.msra.mxu0 %v1720_v11 }
 0x4e6   :  { %1725 = vmatprep.subr.bf16.mxu0 %v1724_v15 }
 0x4e9   :  { %1727 = vmatpush3.bf16.msra.mxu0 %v1724_v15 }
 0x4ea   :  { %1729 = vmatprep.subr.bf16.mxu0 %v1728_v18 }
 0x4ed   :  { %1731 = vmatpush3.bf16.msra.mxu0 %v1728_v18 }
 0x4ee   :  { %1733 = vmatprep.subr.bf16.mxu0 %v1732_v21 }
 0x4f1   :  { %1735 = vmatpush3.bf16.msra.mxu0 %v1732_v21 }
 0x5b7   :  { %v1625_v10 = vpop.f32.mrb[6].mxu0 }
 0x5b8   :  { %v1154_v5 = vpop.f32.mrb[7].mxu0  ;;  %v1160_v7 = vadd.f32 %v1625_v10, %v1477_v14 }
 0x5b9   :  { %v1155_v6 = vadd.f32 %v1477_v14, %v1154_v5 }
 0x5bb   :  { %1634 = vmatprep.mubr.msk.f32.mxu1 %vm116_vm0, %v1155_v6 }
 0x5bc   :  { %1635 = vmatmul.mubr.msk.f32.vlgmr.msra.gmra.mrb[12].mxu1 %vm116_vm0, %v1160_v7 }
 0x68f   :  { %v1636_v23 = vpop.f32.mrb[12].mxu1 }
 0x690   :  { %v1252_v24 = vadd.f32 %v1636_v23, %v1480_v22  ;;  %v1246_v25 = vpop.f32.mrb[13].mxu1 }
 0x691   :  { %v1247_v26 = vadd.f32 %v1480_v22, %v1246_v25 }
 0x692   :  { %v1258_v27 = vmul.f32 0.70710677, %v1252_v24  ;;  %v1256_v34 = vmul.f32 0.5, %v1252_v24 }
 0x693   :  { %v1257_v28 = vmul.f32 0.70710677, %v1247_v26  ;;  %v1255_v32 = vmul.f32 0.5, %v1247_v26 }
 0x694   :  { %1805 = verf.f32 %v1258_v27 }
 0x695   :  { %1807 = verf.f32 %v1257_v28 }
 0x69e   :  { %v1806_v29 = vpop.eup %1805 }
 0x69f   :  { %v1808_v30 = vpop.eup %1807  ;;  %v1262_v31 = vadd.f32 1.0, %v1806_v29 }
 0x6a0   :  { %v1261_v33 = vadd.f32 1.0, %v1808_v30 }
 0x6a1   :  { %v1264_v36 = vmul.f32 %v1262_v31, %v1256_v34 }
 0x6a2   :  { %v1263_v35 = vmul.f32 %v1261_v33, %v1255_v32 }
 0x6a4   :  { %1653 = vmatprep.mubr.msk.f32.mxu0 %vm1280_vm3, %v1263_v35 }
 0x6a5   :  { %1654 = vmatmul.mubr.msk.f32.vlgmr.msra.gmra.mrb[8].mxu0 %vm1280_vm3, %v1264_v36 }
 0x778   :  { %v1655_v38 = vpop.f32.mrb[8].mxu0 }
 0x779   :  { %v1359_v39 = vadd.f32 %v1655_v38, %v1483_v37  ;;  %v1353_v40 = vpop.f32.mrb[9].mxu0 }
 0x77a   :  { %v1354_v41 = vadd.f32 %v1483_v37, %v1353_v40 }
 0x77b   :  { %v1363_v42 = vadd.f32 %v1359_v39, %v1160_v7 }
 0x77c   :  { %v1362_v43 = vadd.f32 %v1354_v41, %v1155_v6 }
 0x77d   :  { %v1367_v44 = vsel %vm116_vm0, %v1363_v42, 0.0 }
 0x77e   :  { %1368 = vadd.xlane.f32.xlu0 %v1367_v44  ;;  %v1364_v45 = vsel %vm116_vm0, %v1362_v43, 0.0 }
 0x77f   :  { %1365 = vadd.xlane.f32.xlu1 %v1364_v45 }
 0x80b   :  { %v1369_v46 = vpop.xlane.xlu0 %1368 }
 0x80c   :  { %v1372_v47 = vmul.f32 0.03125, %v1369_v46  ;;  %v1366_v48 = vpop.xlane.xlu1 %1365 }
 0x80d   :  { %v1371_v49 = vmul.f32 0.03125, %v1366_v48 }
 0x80e   :  { %v1374_v50 = vsub.f32 %v1363_v42, %v1372_v47 }
 0x80f   :  { %v1373_v51 = vsub.f32 %v1362_v43, %v1371_v49 }
 0x810   :  { %v1376_v52 = vmul.f32 %v1374_v50, %v1374_v50 }
 0x811   :  { %v1375_v53 = vmul.f32 %v1373_v51, %v1373_v51 }
 0x812   :  { %v1380_v54 = vsel %vm116_vm0, %v1376_v52, 0.0 }
 0x813   :  { %1381 = vadd.xlane.f32.xlu1 %v1380_v54  ;;  %v1377_v55 = vsel %vm116_vm0, %v1375_v53, 0.0 }
 0x814   :  { %1378 = vadd.xlane.f32.xlu0 %v1377_v55 }
 0x815   :  { %1912 = shalt.err (!%p1909_p8)
}
 0x816   :  { %s1913_s30 = scalar_lea.hbm %s2388_s14, 1024 }
 0x817   :  { %p1914_p9 = scmp.ne.s32.totalorder %s2388_s14, %s1913_s30  ;;  %p1917_p10 = scmp.lt.u32.totalorder %s1913_s30, %s2388_s14 }
 0x819   :  { %p1919_p11 = pnand %p1917_p10, %p1914_p9 }
 0x81b   :  { %1922 = shalt.err (!%p1919_p11)
}
 0x81c   :  { %1434 = dma.vmem_to_hbm [thread:$0]  %s1429_s5, 1024, %s2388_s14, [#allocation12], %s1957_s25, %s1957_s25, %s1958_s26  }
 0x81d   :  { %v1486_v63 = vld [vmem:[%s2385_s11] ss:$0 sm:$0xff]  ;;  %s1966_s14 = smov [#allocation10]  }
 0x81e   :  { %v1487_v3 = vld [vmem:[%s2386_s12] ss:$0 sm:$0xff]  ;;  %s1416_s19 = sshll.u32 %s1966_s14, 4  ;;  %s1417_s19 = int_to_ptr.vmem [resolvable:$true] %s1416_s19 }
 0x81f   :  { %s1923_s2 = scalar_lea.vmem %s1417_s19, 256  ;;  %p1928_p13 = scmp.lt.s32.totalorder %s1417_s19, %s1417_s19 }
 0x820   :  { %p1924_p12 = scmp.ne.s32.totalorder %s1417_s19, %s1923_s2  ;;  %p1929_p0 = scmp.lt.s32.totalorder %s1923_s2, %s1923_s2 }
 0x822   :  { %p1930_p1 = por %p1929_p0, %p1928_p13 }
 0x824   :  { %p1931_p2 = pnand %p1930_p1, %p1924_p12 }
 0x8a0   :  { %v1382_v56 = vpop.xlane.xlu1 %1381 }
 0x8a1   :  { %v1384_v57 = vmul.f32 0.03125, %v1382_v56  ;;  %v1379_v58 = vpop.xlane.xlu0 %1378 }
 0x8a2   :  { %v1383_v59 = vmul.f32 0.03125, %v1379_v58 }
 0x8a3   :  { %v1386_v60 = vadd.f32 1e-05, %v1384_v57 }
 0x8a4   :  { %v1385_v61 = vadd.f32 1e-05, %v1383_v59 }
 0x8a5   :  { %1809 = vrsqrt.f32 %v1386_v60 }
 0x8a6   :  { %1811 = vrsqrt.f32 %v1385_v61 }
 0x8af   :  { %v1810_v62 = vpop.eup %1809 }
 0x8b0   :  { %v1812_v0 = vpop.eup %1811  ;;  %v1390_v1 = vmul.f32 %v1810_v62, %v1374_v50 }
 0x8b1   :  { %v1389_v2 = vmul.f32 %v1812_v0, %v1373_v51 }
 0x8b2   :  { %v1399_v4 = vmul.f32 %v1486_v63, %v1390_v1 }
 0x8b3   :  { %v1398_v14 = vmul.f32 %v1486_v63, %v1389_v2 }
 0x8b4   :  { %v1408_v10 = vadd.f32 %v1487_v3, %v1399_v4 }
 0x8b5   :  { %v1407_v5 = vadd.f32 %v1487_v3, %v1398_v14 }
 0x8b6   :  { %1410 = vst.msk [vmem:[#allocation10 + $0x8] sm:$0xff] %vm116_vm0, %v1408_v10 }
 0x8b7   :  { %1409 = vst.msk [vmem:[#allocation10] sm:$0xff] %vm116_vm0, %v1407_v5 }
 0x8b8   :  { %1934 = shalt.err (!%p1931_p2)
}
 0x8b9   :  { %s1935_s24 = scalar_lea.hbm %s2387_s13, 256 }
 0x8ba   :  { %p1936_p3 = scmp.ne.s32.totalorder %s2387_s13, %s1935_s24  ;;  %p1939_p4 = scmp.lt.u32.totalorder %s1935_s24, %s2387_s13 }
 0x8bc   :  { %p1941_p5 = pnand %p1939_p4, %p1936_p3 }
 0x8be   :  { %1944 = shalt.err (!%p1941_p5)
}
 0x8bf   :  { %1422 = dma.vmem_to_hbm [thread:$0]  %s1417_s19, 256, %s2387_s13, [#allocation4], %s1957_s25, %s1957_s25, %s1958_s26  }
 0x8c0   :  { %1951 = dma.done.wait [#allocation4], 256  }
 0x8c1   :  { %1952 = vsyncadd [#allocation4], 4294967040 }
 0x8c2   :  { %1953 = dma.done.wait [#allocation12], 1024  }
 0x8c3   :  { %1954 = vsyncadd [#allocation12], 4294966272 }
 0x8c4   :  { %1441 = vsyncpa [#allocation3], 1 }
 0x8c5   :  { %1442 = vsyncpa [#allocation6], 1 }
 0x8c6   :  { %1443 = vsyncpa [#allocation9], 1 }
 0x8c7   :  { %1444 = vsyncpa [#allocation4], 1 }
 0x8c8   :  { %1445 = vsyncpa [#allocation12], 1 }

</bundles_post_ra>
